<compile_context>
chip_gen: v7x
topology: tpu7x:2x2x1
jax: 0.10.0
libtpu: 0.0.40
codegen_flags: <defaults>
</compile_context>

<pallas_src>
import jax
import jax.numpy as jnp
from jax.experimental import pallas as pl
from jax.experimental.pallas import tpu as pltpu


def sum_fusion_kernel(xy_ref, w_ref, b_ref, out_ref):
    """One fused matmul + bias, then pack [x_out | y_out | avg] into one slab.

    xy_ref : (B, 2D)   concatenated [x | y]
    w_ref  : (2D, 2O)  block-diag(Wx, Wy)
    b_ref  : (1, 2O)   concatenated [bx | by]
    out_ref: (B, 3O)   [x_out | y_out | (x_out + y_out)/2]
    """
    two_o = w_ref.shape[1]
    o = two_o // 2

    # Single MXU push: r[:, :O] == x @ Wx + bx, r[:, O:] == y @ Wy + by.
    r = jnp.dot(xy_ref[...], w_ref[...],
                preferred_element_type=jnp.float32) + b_ref[...]

    x_out = r[:, :o]
    y_out = r[:, o:]
    avg = (x_out + y_out) * 0.5

    # Exactly one store to one output ref (single writeback DMA).
    out_ref[...] = jnp.concatenate([r, avg], axis=-1).astype(out_ref.dtype)


def sum_fusion(x, y, wx, bx, wy, by):
    """x, y: (B, D); wx, wy: (D, O) (already transposed vs torch); bx, by: (O,).

    Returns (x_out, y_out, (x_out + y_out) / 2), matching SumFusion.forward.
    """
    B, D = x.shape
    O = wx.shape[1]

    # --- parameter packing (would be done once at init in a real model) ---
    W = (jnp.zeros((2 * D, 2 * O), dtype=wx.dtype)
         .at[:D, :O].set(wx)
         .at[D:, O:].set(wy))
    b = jnp.concatenate([bx, by]).reshape(1, 2 * O)

    # --- per-call activation packing ---
    xy = jnp.concatenate([x, y], axis=-1)  # (B, 2D)

    packed = pl.pallas_call(
        sum_fusion_kernel,
        out_shape=jax.ShapeDtypeStruct((B, 3 * O), x.dtype),
        in_specs=[
            pl.BlockSpec(memory_space=pltpu.VMEM),  # xy
            pl.BlockSpec(memory_space=pltpu.VMEM),  # W (block-diag)
            pl.BlockSpec(memory_space=pltpu.VMEM),  # b
        ],
        out_specs=pl.BlockSpec(memory_space=pltpu.VMEM),
    )(xy, W, b)

    # Lazy slices of the single lane-dense slab.
    return packed[:, :O], packed[:, O:2 * O], packed[:, 2 * O:]


if __name__ == "__main__":
    # Small shapes consistent with the module's forward (Linear on last dim).
    batch = 8
    input_dim = 32
    output_dim = 16

    key = jax.random.PRNGKey(0)
    kx, ky, kwx, kbx, kwy, kby = jax.random.split(key, 6)

    x = jax.random.normal(kx, (batch, input_dim), dtype=jnp.float32)
    y = jax.random.normal(ky, (batch, input_dim), dtype=jnp.float32)

    # Deterministic PyTorch-Linear-style init: U(-1/sqrt(fan_in), 1/sqrt(fan_in)).
    bound = 1.0 / (input_dim ** 0.5)
    wx = jax.random.uniform(kwx, (input_dim, output_dim), jnp.float32, -bound, bound)
    bx = jax.random.uniform(kbx, (output_dim,), jnp.float32, -bound, bound)
    wy = jax.random.uniform(kwy, (input_dim, output_dim), jnp.float32, -bound, bound)
    by = jax.random.uniform(kby, (output_dim,), jnp.float32, -bound, bound)

    x_out, y_out, out = sum_fusion(x, y, wx, bx, wy, by)
    jax.block_until_ready((x_out, y_out, out))

    # Reference check against plain JAX.
    x_ref = x @ wx + bx
    y_ref = y @ wy + by
    out_ref = (x_ref + y_ref) / 2.0
    assert jnp.allclose(x_out, x_ref, atol=1e-5, rtol=1e-5)
    assert jnp.allclose(y_out, y_ref, atol=1e-5, rtol=1e-5)
    assert jnp.allclose(out, out_ref, atol=1e-5, rtol=1e-5)

    print("KERNEL_OK")
</pallas_src>

<mosaic_0001>
module attributes {stable_mosaic.version = 11 : i64} {
  func.func @sum_fusion_kernel(%arg0: memref<8x64xf32, #tpu.memory_space<vmem>>, %arg1: memref<64x32xf32, #tpu.memory_space<vmem>>, %arg2: memref<1x32xf32, #tpu.memory_space<vmem>>, %arg3: memref<8x48xf32, #tpu.memory_space<vmem>>) attributes {dimension_semantics = [], scalar_prefetch = 0 : i64, scratch_operands = 0 : i64, tpu.core_type = #tpu.core_type<tc>} {
    %c0 = arith.constant 0 : index
    %c0_0 = arith.constant 0 : index
    %0 = vector.load %arg0[%c0, %c0_0] : memref<8x64xf32, #tpu.memory_space<vmem>>, vector<8x64xf32>
    %c0_1 = arith.constant 0 : index
    %c0_2 = arith.constant 0 : index
    %1 = vector.load %arg1[%c0_1, %c0_2] : memref<64x32xf32, #tpu.memory_space<vmem>>, vector<64x32xf32>
    %cst = arith.constant dense<0.000000e+00> : vector<8x32xf32>
    %2 = tpu.matmul %0, %1, %cst {dimension_numbers = #tpu.dot_dimension_numbers<[1], [0], [0], [1], [0, 0, 1, 1], [], []>} : vector<8x64xf32>, vector<64x32xf32>, vector<8x32xf32> -> vector<8x32xf32>
    %c0_3 = arith.constant 0 : index
    %c0_4 = arith.constant 0 : index
    %3 = vector.load %arg2[%c0_3, %c0_4] : memref<1x32xf32, #tpu.memory_space<vmem>>, vector<1x32xf32>
    %4 = vector.broadcast %3 : vector<1x32xf32> to vector<8x32xf32>
    %5 = arith.addf %2, %4 : vector<8x32xf32>
    %6 = vector.extract_strided_slice %5 {offsets = [0, 0], sizes = [8, 16], strides = [1, 1]} : vector<8x32xf32> to vector<8x16xf32>
    %7 = vector.extract_strided_slice %5 {offsets = [0, 16], sizes = [8, 16], strides = [1, 1]} : vector<8x32xf32> to vector<8x16xf32>
    %8 = arith.addf %6, %7 : vector<8x16xf32>
    %cst_5 = arith.constant 5.000000e-01 : f32
    %9 = vector.broadcast %cst_5 : f32 to vector<8x16xf32>
    %10 = arith.mulf %8, %9 : vector<8x16xf32>
    %11 = tpu.concatenate %5, %10 in 1 : vector<8x32xf32>, vector<8x16xf32> -> vector<8x48xf32>
    %c0_6 = arith.constant 0 : index
    %c0_7 = arith.constant 0 : index
    %12 = vector.load %arg3[%c0_6, %c0_7] : memref<8x48xf32, #tpu.memory_space<vmem>>, vector<8x48xf32>
    tpu.vector_store %arg3[%c0_6, %c0_7], %11 {strides = array<i32>} : memref<8x48xf32, #tpu.memory_space<vmem>>, vector<8x48xf32>,
    return
  }
}

</mosaic_0001>

<bundles_post_ra>
// kernel: tpu_custom_call.1
= control target key start
LH: loop header
LB: loop body
LE: loop exit
PB: predicated region body
PF: predicated region fallthrough
CT: control target
= control target key end

     0   :  { %v205_v3 = vmov 0.0|0.0   ;;  %vm206_vm0 = vmmov 0   ;;  %v207_v6 = vmov 0.0   ;;  %s273_s0 = inlined_call_operand.vmem [shape: f32[8,64], index: 0, kind: input, shape index: {}]   ;;  %s274_s1 = inlined_call_operand.vmem [shape: f32[64,32], index: 1, kind: input, shape index: {}]   ;;  %s275_s2 = inlined_call_operand.vmem [shape: f32[1,32], index: 2, kind: input, shape index: {}]   ;;  %s276_s3 = inlined_call_operand.hbm [shape: f32[8,48], index: 3, kind: output, shape index: {}]  }
   0x1   :  { %v16_v0 = vld [vmem:[%s274_s1] sm:$0xff]  ;;  %v17_v1 = vld [vmem:[%s274_s1 + $0x8] sm:$0xff]  ;;  %v18_v2 = vld [vmem:[%s274_s1 + $0x10] sm:$0xff]  ;;  %163 = vmatprep.subr.bf16.mxu0 %v205_v3  ;;  %160 = vmatprep.mubr.msk.f32.mxu0 %vm206_vm0, %v207_v6 }
   0x2   :  { %v164_v4 = vpack.c.bf16 %v17_v1, %v16_v0  ;;  %v19_v5 = vld [vmem:[%s274_s1 + $0x18] sm:$0xff] }
   0x3   :  { %v167_v7 = vpack.c.bf16 %v19_v5, %v18_v2 }
   0x4   :  { %165 = vmatpush3.bf16.msra.mxu0 %v164_v4 }
   0x5   :  { %8 = vsyncpa [#allocation3], 0  ;;  %166 = vmatprep.subr.bf16.mxu0 %v205_v3  ;;  %v20_v8 = vld [vmem:[%s274_s1 + $0x20] sm:$0xff]  ;;  %v21_v9 = vld [vmem:[%s274_s1 + $0x28] sm:$0xff]  ;;  %vm31_vm1 = vcmask 523264   ;;  %s208_s5 = smov 112  }
   0x6   :  { %v170_v10 = vpack.c.bf16 %v21_v9, %v20_v8  ;;  %v22_v11 = vld [vmem:[%s274_s1 + $0x30] sm:$0xff]  ;;  %v23_v12 = vld [vmem:[%s274_s1 + $0x38] sm:$0xff]  ;;  %v15_v14 = vld [vmem:[%s273_s0] sm:$0xff]  ;;  %s209_s1 = smov 32   ;;  %s210_s6 = smov [#allocation2]   ;;  %vm115_vm2 = vcmask 261120  }
   0x7   :  { %v173_v13 = vpack.c.bf16 %v23_v12, %v22_v11  ;;  %v133_v15 = vld [vmem:[%s275_s2] ss:$0 sm:$0xff]  ;;  %s125_s7 = sshll.u32 %s210_s6, 4  ;;  %vm117_vm3 = vcmask 392192   ;;  %s126_s7 = int_to_ptr.vmem [resolvable:$true] %s125_s7 }
   0x8   :  { %168 = vmatpush3.bf16.msra.mxu0 %v167_v7  ;;  %s181_s0 = scalar_lea.vmem %s126_s7, 128  ;;  %p186_p1 = scmp.lt.s32.totalorder %s126_s7, %s126_s7 }
   0x9   :  { %169 = vmatprep.subr.bf16.mxu0 %v205_v3  ;;  %p182_p0 = scmp.ne.s32.totalorder %s126_s7, %s181_s0  ;;  %p187_p2 = scmp.lt.s32.totalorder %s181_s0, %s181_s0 }
   0xb   :  { %p188_p3 = por %p187_p2, %p186_p1 }
   0xc   :  { %171 = vmatpush3.bf16.msra.mxu0 %v170_v10 }
   0xd   :  { %172 = vmatprep.subr.bf16.mxu0 %v205_v3  ;;  %p189_p4 = pnand %p188_p3, %p182_p0 }
  0x10   :  { %174 = vmatpush3.bf16.msra.mxu0 %v173_v13 }
  0x13   :  { %161 = vmatmul.mubr.msk.f32.vlgmr.msra.gmra.mrb[0].mxu0 %vm31_vm1, %v15_v14 }
  0xe6   :  { %v101_v16 = vpop.f32.mrb[0].mxu0 }
  0xe7   :  { %v102_v17 = vadd.f32 %v133_v15, %v101_v16  ;;  %v162_v18 = vpop.f32.mrb[1].mxu0 }
  0xe9   :  { %106 = vrot.lane.b32.xlu0 %v102_v17, %s208_s5 }
 0x15b   :  { %v107_v19 = vpop.permute.xlu0 %106 }
 0x15c   :  { %v109_v20 = vadd.f32 %v107_v19, %v102_v17 }
 0x15e   :  { %v110_v21 = vmul.f32 0.5, %v109_v20 }
 0x160   :  { %112 = vrot.lane.b32.xlu0 %v110_v21, %s209_s1 }
 0x1d2   :  { %v113_v22 = vpop.permute.xlu0 %112 }
 0x1d3   :  { %v116_v23 = vsel %vm115_vm2, %v102_v17, %v113_v22 }
 0x1d4   :  { %118 = vst.msk [vmem:[#allocation2] sm:$0xff] %vm117_vm3, %v116_v23 }
 0x1d5   :  { %192 = shalt.err (!%p189_p4)
}
 0x1d6   :  { %s193_s9 = scalar_lea.hbm %s276_s3, 128 }
 0x1d7   :  { %p194_p5 = scmp.ne.s32.totalorder %s276_s3, %s193_s9  ;;  %p197_p6 = scmp.lt.u32.totalorder %s193_s9, %s276_s3 }
 0x1d9   :  { %p199_p7 = pnand %p197_p6, %p194_p5 }
 0x1db   :  { %202 = shalt.err (!%p199_p7)
}
 0x1dc   :  { %128 = dma.vmem_to_hbm [thread:$0]  %s126_s7, 128, %s276_s3, [#allocation3]  }
 0x1dd   :  { %203 = dma.done.wait [#allocation3], 128  }
 0x1de   :  { %204 = vsyncadd [#allocation3], 4294967168 }
 0x1df   :  { %132 = vsyncpa [#allocation3], 1 }

</bundles_post_ra>
